<compile_context>
chip_gen: v7x
topology: tpu7x:2x2x1
jax: 0.10.0
libtpu: 0.0.40
codegen_flags: <defaults>
</compile_context>

<pallas_src>
import functools

import jax
import jax.numpy as jnp
from jax import lax
from jax.experimental import pallas as pl
from jax.experimental.pallas import tpu as pltpu


def basic_block_kernel(x_ref, w1_ref, b1_ref, w2_ref, b2_ref, out_ref, *, img_rows):
    """One grid step == B_blk batch elements, flattened to a (M, W*C) slab.

    x_ref   : (M, WC)       lane-dense bf16 activation slab (conv1 input + residual),
                            M = B_blk * H
    w1_ref  : (3*WC, WC)    conv1 banded weights, taps stacked along K, BN1 scale folded, bf16
    b1_ref  : (1, WC)       folded BN1 bias, tiled over W (f32)
    w2_ref  : (3*WC, WC)    conv2 banded weights (BN2 scale folded), bf16
    b2_ref  : (1, WC)
    out_ref : (M, WC)       lane-dense f32 output slab
    """
    x = x_ref[...]                                             # (M, WC) bf16, dense load
    m, wc = x.shape

    # Per-image boundary masks for the vertical taps (row % H == 0 / H-1).
    row = lax.broadcasted_iota(jnp.int32, (m, 1), 0)
    not_first = (row % img_rows) != 0                          # dn tap uses x[h-1]
    not_last = (row % img_rows) != (img_rows - 1)              # up tap uses x[h+1]

    def conv3x3(xin, w_ref):
        # xin: (M, WC) bf16.  Row padding = masked zero-row shifts; column padding is
        # already folded into the band structure of w_ref.  Single MXU dot, f32 acc.
        zrow = jnp.zeros((1, wc), xin.dtype)
        x_dn = jnp.concatenate([zrow, xin[:-1, :]], axis=0)    # x[h-1]  (tap dy=0)
        x_up = jnp.concatenate([xin[1:, :], zrow], axis=0)     # x[h+1]  (tap dy=2)
        x_dn = jnp.where(not_first, x_dn, jnp.zeros_like(x_dn))
        x_up = jnp.where(not_last, x_up, jnp.zeros_like(x_up))
        x_cat = jnp.concatenate([x_dn, xin, x_up], axis=-1)    # (M, 3*WC)
        return jnp.dot(x_cat, w_ref[...], preferred_element_type=jnp.float32)

    # ---- conv1 (BN1 scale folded into weights) -> +bias -> ReLU ----
    h1 = jnp.maximum(conv3x3(x, w1_ref) + b1_ref[0, :], 0.0)          # (M, WC) f32

    # ---- conv2 (BN2 scale folded) -> +bias -> +residual -> ReLU ----
    out = conv3x3(h1.astype(jnp.bfloat16), w2_ref) + b2_ref[0, :] + x.astype(jnp.float32)
    out_ref[...] = jnp.maximum(out, 0.0).astype(out_ref.dtype)


def _band_cat(w, scale, W):
    """(3,3,Cin,Cout) HWIO conv weights (+ folded BN scale) -> (3*W*Cin, W*Cout) bf16.

    For each kernel row dy: band[dy][wp*Cin+ci, wo*Cout+co] = w[dy, wp-wo+1, ci, co]
    for |wp - wo| <= 1, else 0 (column padding folds into the band structure).
    The three bands are stacked along K so the kernel can do one fat matmul.
    """
    w = w * scale.reshape(1, 1, 1, -1)                     # fold BN scale (out channels)
    cin, cout = w.shape[2], w.shape[3]
    bands = []
    for dy in range(3):
        b = jnp.zeros((W * cin, W * cout), jnp.float32)
        for dx in range(3):
            b = b + jnp.kron(jnp.eye(W, k=1 - dx, dtype=jnp.float32), w[dy, dx])
        bands.append(b)
    return jnp.concatenate(bands, axis=0).astype(jnp.bfloat16)   # (3*W*Cin, W*Cout)


def make_block_params(w1, s1, b1, w2, s2, b2, W):
    """Build per-layer cached kernel parameters ONCE (do not rebuild per forward)."""
    wc = W * w1.shape[3]
    return (_band_cat(w1, s1, W),
            jnp.tile(b1.reshape(-1), W).reshape(1, wc).astype(jnp.float32),
            _band_cat(w2, s2, W),
            jnp.tile(b2.reshape(-1), W).reshape(1, wc).astype(jnp.float32))


def _pick_batch_block(n, h, target_rows=256, max_rows=512):
    """Largest divisor of n keeping B_blk*H <= max_rows; stop growing once the MXU-row
    target is reached so the grid keeps >= 2 steps (megacore / v7x) when n allows."""
    best = 1
    for b in range(1, n + 1):
        if n % b:
            continue
        if b * h > max_rows:
            break
        best = b
        if b * h >= target_rows:
            break
    return best


def basic_block(x, params):
    """x: (N, H, W, C) f32 NHWC.  stride=1, downsample=None.  params from make_block_params."""
    N, H, W, C = x.shape
    WC = W * C
    w1c, b1t, w2c, b2t = params
    assert w1c.shape == (3 * WC, WC) and b1t.shape == (1, WC)

    b_blk = _pick_batch_block(N, H)
    m_blk = b_blk * H

    # Lane-dense bf16 activation slab: contiguous reshape, halves activation HBM bytes.
    x2 = x.astype(jnp.bfloat16).reshape(N * H, WC)

    kernel = functools.partial(basic_block_kernel, img_rows=H)
    out2 = pl.pallas_call(
        kernel,
        out_shape=jax.ShapeDtypeStruct((N * H, WC), jnp.float32),
        grid=(N // b_blk,),
        in_specs=[
            pl.BlockSpec((m_blk, WC), lambda n: (n, 0)),        # activations (lane-dense)
            pl.BlockSpec((3 * WC, WC), lambda n: (0, 0)),       # conv1 banded weights (const)
            pl.BlockSpec((1, WC), lambda n: (0, 0)),            # bias1
            pl.BlockSpec((3 * WC, WC), lambda n: (0, 0)),       # conv2 banded weights (const)
            pl.BlockSpec((1, WC), lambda n: (0, 0)),            # bias2
        ],
        out_specs=pl.BlockSpec((m_blk, WC), lambda n: (n, 0)),
        compiler_params=pltpu.CompilerParams(
            dimension_semantics=("parallel",)),                 # batch-block axis
    )(x2, w1c, b1t, w2c, b2t)
    return out2.reshape(N, H, W, C)


# -------------------- pure-JAX reference (mirrors the kernel's mixed precision) ------------
def _ref_basic_block(x, w1, s1, b1, w2, s2, b2):
    dn = ('NHWC', 'HWIO', 'NHWC')
    xb = x.astype(jnp.bfloat16)                                  # activations quantized like kernel
    w1s = (w1 * s1.reshape(1, 1, 1, -1)).astype(jnp.bfloat16)    # BN scale folded, then bf16
    w2s = (w2 * s2.reshape(1, 1, 1, -1)).astype(jnp.bfloat16)
    out = lax.conv_general_dilated(
        xb, w1s, (1, 1), ((1, 1), (1, 1)),
        dimension_numbers=dn, preferred_element_type=jnp.float32)
    out = jnp.maximum(out + b1.reshape(1, 1, 1, -1), 0.0)
    out = lax.conv_general_dilated(
        out.astype(jnp.bfloat16), w2s, (1, 1), ((1, 1), (1, 1)),
        dimension_numbers=dn, preferred_element_type=jnp.float32)
    out = out + b2.reshape(1, 1, 1, -1) + xb.astype(jnp.float32)
    return jnp.maximum(out, 0.0)


def _fold_bn(gamma, beta, mean, var, eps=1e-5):
    scale = gamma / jnp.sqrt(var + eps)
    bias = beta - mean * scale
    return scale, bias


if __name__ == "__main__":
    key = jax.random.PRNGKey(0)
    N, H, W, C = 2, 16, 16, 8      # inplanes == planes == 8, stride=1, no downsample; W*C == 128
    ks = jax.random.split(key, 9)

    x = jax.random.normal(ks[0], (N, H, W, C), jnp.float32)

    # conv weights in HWIO layout
    w1 = jax.random.normal(ks[1], (3, 3, C, C), jnp.float32) * 0.1
    w2 = jax.random.normal(ks[2], (3, 3, C, C), jnp.float32) * 0.1

    # BatchNorm params / running stats (eval-mode fold)
    g1 = 1.0 + 0.1 * jax.random.normal(ks[3], (C,), jnp.float32)
    be1 = 0.1 * jax.random.normal(ks[4], (C,), jnp.float32)
    m1 = 0.1 * jax.random.normal(ks[5], (C,), jnp.float32)
    v1 = jnp.abs(1.0 + 0.1 * jax.random.normal(ks[6], (C,), jnp.float32))
    g2 = 1.0 + 0.1 * jax.random.normal(ks[7], (C,), jnp.float32)
    be2 = 0.1 * jax.random.normal(ks[8], (C,), jnp.float32)
    m2 = jnp.zeros((C,), jnp.float32)
    v2 = jnp.ones((C,), jnp.float32)

    s1, b1 = _fold_bn(g1, be1, m1, v1)
    s2, b2 = _fold_bn(g2, be2, m2, v2)

    # Per-layer parameter prep (banded weights, folded scales) is built ONCE and cached.
    params = make_block_params(w1, s1, b1, w2, s2, b2, W)

    out = basic_block(x, params)
    out = jax.block_until_ready(out)

    ref = _ref_basic_block(x, w1, s1, b1, w2, s2, b2)
    assert out.shape == (N, H, W, C)
    assert jnp.allclose(out, ref, atol=2e-2, rtol=2e-2), "mismatch vs reference"

    print("KERNEL_OK")
</pallas_src>

<mosaic_0001>
module attributes {stable_mosaic.version = 11 : i64} {
  func.func @basic_block_kernel(%arg0: i32, %arg1: memref<32x128xbf16, #tpu.memory_space<vmem>>, %arg2: memref<384x128xbf16, #tpu.memory_space<vmem>>, %arg3: memref<1x128xf32, #tpu.memory_space<vmem>>, %arg4: memref<384x128xbf16, #tpu.memory_space<vmem>>, %arg5: memref<1x128xf32, #tpu.memory_space<vmem>>, %arg6: memref<32x128xf32, #tpu.memory_space<vmem>>) attributes {dimension_semantics = [#tpu.dimension_semantics<parallel>], iteration_bounds = array<i64: 1>, scalar_prefetch = 0 : i64, scratch_operands = 0 : i64, tpu.core_type = #tpu.core_type<tc>, window_params = [{transform_indices = @transform_0, window_bounds = array<i64: 32, 128>}, {pipeline_mode = #tpu.pipeline_mode<synchronous>, transform_indices = @transform_1, window_bounds = array<i64: 384, 128>}, {pipeline_mode = #tpu.pipeline_mode<synchronous>, transform_indices = @transform_2, window_bounds = array<i64: 1, 128>}, {pipeline_mode = #tpu.pipeline_mode<synchronous>, transform_indices = @transform_3, window_bounds = array<i64: 384, 128>}, {pipeline_mode = #tpu.pipeline_mode<synchronous>, transform_indices = @transform_4, window_bounds = array<i64: 1, 128>}, {transform_indices = @transform_5, window_bounds = array<i64: 32, 128>}]} {
    %c0 = arith.constant 0 : index
    %c0_0 = arith.constant 0 : index
    %0 = vector.load %arg1[%c0, %c0_0] : memref<32x128xbf16, #tpu.memory_space<vmem>>, vector<32x128xbf16>
    %1 = tpu.iota {dimensions = array<i32: 0>} : vector<32x1xi32>
    %c16_i32 = arith.constant 16 : i32
    %c0_i32 = arith.constant 0 : i32
    %2 = arith.cmpi eq, %c16_i32, %c0_i32 : i32
    %c1_i32 = arith.constant 1 : i32
    %3 = arith.select %2, %c1_i32, %c16_i32 : i32
    %4 = vector.broadcast %3 : i32 to vector<32x1xi32>
    %5 = arith.remsi %1, %4 : vector<32x1xi32>
    %c0_i32_1 = arith.constant 0 : i32
    %6 = vector.broadcast %c0_i32_1 : i32 to vector<32x1xi32>
    %7 = arith.cmpi ne, %5, %6 : vector<32x1xi32>
    %c0_i32_2 = arith.constant 0 : i32
    %8 = vector.broadcast %c0_i32_2 : i32 to vector<32x1xi32>
    %9 = arith.cmpi slt, %5, %8 : vector<32x1xi32>
    %c0_i32_3 = arith.constant 0 : i32
    %10 = arith.cmpi slt, %3, %c0_i32_3 : i32
    %11 = vector.broadcast %10 : i1 to vector<32x1xi1>
    %12 = vector.broadcast %11 : vector<32x1xi1> to vector<32x1xi1>
    %13 = arith.xori %9, %12 : vector<32x1xi1>
    %14 = arith.andi %13, %7 : vector<32x1xi1>
    %15 = vector.broadcast %3 : i32 to vector<32x1xi32>
    %16 = arith.addi %5, %15 : vector<32x1xi32>
    %17 = arith.select %14, %16, %5 : vector<32x1xi1>, vector<32x1xi32>
    %c0_i32_4 = arith.constant 0 : i32
    %18 = vector.broadcast %c0_i32_4 : i32 to vector<32x1xi32>
    %19 = arith.cmpi ne, %17, %18 : vector<32x1xi32>
    %c16_i32_5 = arith.constant 16 : i32
    %c0_i32_6 = arith.constant 0 : i32
    %20 = arith.cmpi eq, %c16_i32_5, %c0_i32_6 : i32
    %c1_i32_7 = arith.constant 1 : i32
    %21 = arith.select %20, %c1_i32_7, %c16_i32_5 : i32
    %22 = vector.broadcast %21 : i32 to vector<32x1xi32>
    %23 = arith.remsi %1, %22 : vector<32x1xi32>
    %c0_i32_8 = arith.constant 0 : i32
    %24 = vector.broadcast %c0_i32_8 : i32 to vector<32x1xi32>
    %25 = arith.cmpi ne, %23, %24 : vector<32x1xi32>
    %c0_i32_9 = arith.constant 0 : i32
    %26 = vector.broadcast %c0_i32_9 : i32 to vector<32x1xi32>
    %27 = arith.cmpi slt, %23, %26 : vector<32x1xi32>
    %c0_i32_10 = arith.constant 0 : i32
    %28 = arith.cmpi slt, %21, %c0_i32_10 : i32
    %29 = vector.broadcast %28 : i1 to vector<32x1xi1>
    %30 = vector.broadcast %29 : vector<32x1xi1> to vector<32x1xi1>
    %31 = arith.xori %27, %30 : vector<32x1xi1>
    %32 = arith.andi %31, %25 : vector<32x1xi1>
    %33 = vector.broadcast %21 : i32 to vector<32x1xi32>
    %34 = arith.addi %23, %33 : vector<32x1xi32>
    %35 = arith.select %32, %34, %23 : vector<32x1xi1>, vector<32x1xi32>
    %c15_i32 = arith.constant 15 : i32
    %36 = vector.broadcast %c15_i32 : i32 to vector<32x1xi32>
    %37 = arith.cmpi ne, %35, %36 : vector<32x1xi32>
    %cst = arith.constant 0.000000e+00 : bf16
    %38 = vector.broadcast %cst : bf16 to vector<1x128xbf16>
    %39 = vector.extract_strided_slice %0 {offsets = [0, 0], sizes = [31, 128], strides = [1, 1]} : vector<32x128xbf16> to vector<31x128xbf16>
    %40 = tpu.concatenate %38, %39 in 0 : vector<1x128xbf16>, vector<31x128xbf16> -> vector<32x128xbf16>
    %41 = vector.extract_strided_slice %0 {offsets = [1, 0], sizes = [31, 128], strides = [1, 1]} : vector<32x128xbf16> to vector<31x128xbf16>
    %42 = tpu.concatenate %41, %38 in 0 : vector<31x128xbf16>, vector<1x128xbf16> -> vector<32x128xbf16>
    %cst_11 = arith.constant 0.000000e+00 : bf16
    %43 = vector.broadcast %cst_11 : bf16 to vector<32x128xbf16>
    %44 = vector.shape_cast %19 : vector<32x1xi1> to vector<32x1xi1>
    %45 = vector.broadcast %44 : vector<32x1xi1> to vector<32x128xi1>
    %46 = arith.select %45, %40, %43 : vector<32x128xi1>, vector<32x128xbf16>
    %cst_12 = arith.constant 0.000000e+00 : bf16
    %47 = vector.broadcast %cst_12 : bf16 to vector<32x128xbf16>
    %48 = vector.shape_cast %37 : vector<32x1xi1> to vector<32x1xi1>
    %49 = vector.broadcast %48 : vector<32x1xi1> to vector<32x128xi1>
    %50 = arith.select %49, %42, %47 : vector<32x128xi1>, vector<32x128xbf16>
    %51 = tpu.concatenate %46, %0, %50 in 1 : vector<32x128xbf16>, vector<32x128xbf16>, vector<32x128xbf16> -> vector<32x384xbf16>
    %c0_13 = arith.constant 0 : index
    %c0_14 = arith.constant 0 : index
    %52 = vector.load %arg2[%c0_13, %c0_14] : memref<384x128xbf16, #tpu.memory_space<vmem>>, vector<384x128xbf16>
    %cst_15 = arith.constant dense<0.000000e+00> : vector<32x128xf32>
    %53 = tpu.matmul %51, %52, %cst_15 {dimension_numbers = #tpu.dot_dimension_numbers<[1], [0], [0], [1], [0, 0, 1, 1], [], []>} : vector<32x384xbf16>, vector<384x128xbf16>, vector<32x128xf32> -> vector<32x128xf32>
    %c0_16 = arith.constant 0 : index
    %c0_17 = arith.constant 0 : index
    %54 = vector.load %arg3[%c0_16, %c0_17] : memref<1x128xf32, #tpu.memory_space<vmem>>, vector<1x128xf32>
    %55 = vector.shape_cast %54 : vector<1x128xf32> to vector<128xf32>
    %56 = vector.shape_cast %55 : vector<128xf32> to vector<1x128xf32>
    %57 = vector.broadcast %56 : vector<1x128xf32> to vector<32x128xf32>
    %58 = arith.addf %53, %57 : vector<32x128xf32>
    %cst_18 = arith.constant 0.000000e+00 : f32
    %59 = vector.broadcast %cst_18 : f32 to vector<32x128xf32>
    %60 = arith.maximumf %58, %59 : vector<32x128xf32>
    %61 = arith.truncf %60 : vector<32x128xf32> to vector<32x128xbf16>
    %cst_19 = arith.constant 0.000000e+00 : bf16
    %62 = vector.broadcast %cst_19 : bf16 to vector<1x128xbf16>
    %63 = vector.extract_strided_slice %61 {offsets = [0, 0], sizes = [31, 128], strides = [1, 1]} : vector<32x128xbf16> to vector<31x128xbf16>
    %64 = tpu.concatenate %62, %63 in 0 : vector<1x128xbf16>, vector<31x128xbf16> -> vector<32x128xbf16>
    %65 = vector.extract_strided_slice %61 {offsets = [1, 0], sizes = [31, 128], strides = [1, 1]} : vector<32x128xbf16> to vector<31x128xbf16>
    %66 = tpu.concatenate %65, %62 in 0 : vector<31x128xbf16>, vector<1x128xbf16> -> vector<32x128xbf16>
    %cst_20 = arith.constant 0.000000e+00 : bf16
    %67 = vector.broadcast %cst_20 : bf16 to vector<32x128xbf16>
    %68 = vector.shape_cast %19 : vector<32x1xi1> to vector<32x1xi1>
    %69 = vector.broadcast %68 : vector<32x1xi1> to vector<32x128xi1>
    %70 = arith.select %69, %64, %67 : vector<32x128xi1>, vector<32x128xbf16>
    %cst_21 = arith.constant 0.000000e+00 : bf16
    %71 = vector.broadcast %cst_21 : bf16 to vector<32x128xbf16>
    %72 = vector.shape_cast %37 : vector<32x1xi1> to vector<32x1xi1>
    %73 = vector.broadcast %72 : vector<32x1xi1> to vector<32x128xi1>
    %74 = arith.select %73, %66, %71 : vector<32x128xi1>, vector<32x128xbf16>
    %75 = tpu.concatenate %70, %61, %74 in 1 : vector<32x128xbf16>, vector<32x128xbf16>, vector<32x128xbf16> -> vector<32x384xbf16>
    %c0_22 = arith.constant 0 : index
    %c0_23 = arith.constant 0 : index
    %76 = vector.load %arg4[%c0_22, %c0_23] : memref<384x128xbf16, #tpu.memory_space<vmem>>, vector<384x128xbf16>
    %cst_24 = arith.constant dense<0.000000e+00> : vector<32x128xf32>
    %77 = tpu.matmul %75, %76, %cst_24 {dimension_numbers = #tpu.dot_dimension_numbers<[1], [0], [0], [1], [0, 0, 1, 1], [], []>} : vector<32x384xbf16>, vector<384x128xbf16>, vector<32x128xf32> -> vector<32x128xf32>
    %c0_25 = arith.constant 0 : index
    %c0_26 = arith.constant 0 : index
    %78 = vector.load %arg5[%c0_25, %c0_26] : memref<1x128xf32, #tpu.memory_space<vmem>>, vector<1x128xf32>
    %79 = vector.shape_cast %78 : vector<1x128xf32> to vector<128xf32>
    %80 = vector.shape_cast %79 : vector<128xf32> to vector<1x128xf32>
    %81 = vector.broadcast %80 : vector<1x128xf32> to vector<32x128xf32>
    %82 = arith.addf %77, %81 : vector<32x128xf32>
    %83 = arith.extf %0 : vector<32x128xbf16> to vector<32x128xf32>
    %84 = arith.addf %82, %83 : vector<32x128xf32>
    %cst_27 = arith.constant 0.000000e+00 : f32
    %85 = vector.broadcast %cst_27 : f32 to vector<32x128xf32>
    %86 = arith.maximumf %84, %85 : vector<32x128xf32>
    %c0_28 = arith.constant 0 : index
    %c0_29 = arith.constant 0 : index
    %87 = vector.load %arg6[%c0_28, %c0_29] : memref<32x128xf32, #tpu.memory_space<vmem>>, vector<32x128xf32>
    tpu.vector_store %arg6[%c0_28, %c0_29], %86 {strides = array<i32>} : memref<32x128xf32, #tpu.memory_space<vmem>>, vector<32x128xf32>,
    return
  }
  func.func @transform_0(%arg0: i32) -> (i32, i32) {
    %c0_i32 = arith.constant 0 : i32
    %c0_i32_0 = arith.constant 0 : i32
    return %arg0, %c0_i32 : i32, i32
  }
  func.func @transform_1(%arg0: i32) -> (i32, i32) {
    %c0_i32 = arith.constant 0 : i32
    %c0_i32_0 = arith.constant 0 : i32
    %c0_i32_1 = arith.constant 0 : i32
    return %c0_i32, %c0_i32_0 : i32, i32
  }
  func.func @transform_2(%arg0: i32) -> (i32, i32) {
    %c0_i32 = arith.constant 0 : i32
    %c0_i32_0 = arith.constant 0 : i32
    %c0_i32_1 = arith.constant 0 : i32
    return %c0_i32, %c0_i32_0 : i32, i32
  }
  func.func @transform_3(%arg0: i32) -> (i32, i32) {
    %c0_i32 = arith.constant 0 : i32
    %c0_i32_0 = arith.constant 0 : i32
    %c0_i32_1 = arith.constant 0 : i32
    return %c0_i32, %c0_i32_0 : i32, i32
  }
  func.func @transform_4(%arg0: i32) -> (i32, i32) {
    %c0_i32 = arith.constant 0 : i32
    %c0_i32_0 = arith.constant 0 : i32
    %c0_i32_1 = arith.constant 0 : i32
    return %c0_i32, %c0_i32_0 : i32, i32
  }
  func.func @transform_5(%arg0: i32) -> (i32, i32) {
    %c0_i32 = arith.constant 0 : i32
    %c0_i32_0 = arith.constant 0 : i32
    return %arg0, %c0_i32 : i32, i32
  }
}

</mosaic_0001>

<bundles_post_ra>
// kernel: tpu_custom_call.1
= control target key start
LH: loop header
LB: loop body
LE: loop exit
PB: predicated region body
PF: predicated region fallthrough
CT: control target
= control target key end

     0   :  { %10 = vsyncpa [#allocation3], 0  ;;  %s1433_s0 = inlined_call_operand.hbm [shape: bf16[32,128], index: 0, kind: input, shape index: {}]   ;;  %s1434_s1 = inlined_call_operand.hbm [shape: bf16[384,128], index: 1, kind: input, shape index: {}]   ;;  %s1435_s2 = inlined_call_operand.vmem [shape: f32[1,128], index: 2, kind: input, shape index: {}]   ;;  %s1436_s3 = inlined_call_operand.hbm [shape: bf16[384,128], index: 3, kind: input, shape index: {}]   ;;  %s1437_s4 = inlined_call_operand.vmem [shape: f32[1,128], index: 4, kind: input, shape index: {}]   ;;  %s1438_s5 = inlined_call_operand.hbm [shape: f32[32,128], index: 5, kind: output, shape index: {}]  }
   0x1   :  { %11 = vsyncpa [#allocation6], 0 }
   0x2   :  { %12 = vsyncpa [#allocation4], 0  ;;  %s1226_s18 = smov [#allocation5]   ;;  %s1227_s20 = smov [#allocation2]  }
   0x3   :  { %s30_s19 = sshll.u32 %s1226_s18, 4  ;;  %s18_s21 = sshll.u32 %s1227_s20, 4  ;;  %s31_s19 = int_to_ptr.vmem [resolvable:$true] %s30_s19  ;;  %s1266_s21 = int_to_ptr.vmem [resolvable:$true] %s18_s21 }
   0x4   :  { %s1132_s24 = scalar_lea.hbm %s1434_s1, 3072 }
   0x5   :  { %p1133_p0 = scmp.ne.s32.totalorder %s1434_s1, %s1132_s24  ;;  %p1136_p1 = scmp.lt.u32.totalorder %s1132_s24, %s1434_s1 }
   0x7   :  { %p1138_p2 = pnand %p1136_p1, %p1133_p0 }
   0x9   :  { %1141 = shalt.err (!%p1138_p2)
}
   0xa   :  { %s1142_s29 = scalar_lea.vmem %s31_s19, 3072  ;;  %p1147_p4 = scmp.lt.s32.totalorder %s31_s19, %s31_s19 }
   0xb   :  { %p1143_p3 = scmp.ne.s32.totalorder %s31_s19, %s1142_s29  ;;  %p1148_p5 = scmp.lt.s32.totalorder %s1142_s29, %s1142_s29 }
   0xd   :  { %p1149_p6 = por %p1148_p5, %p1147_p4 }
   0xf   :  { %p1150_p7 = pnand %p1149_p6, %p1143_p3 }
  0x11   :  { %1153 = shalt.err (!%p1150_p7)
}
  0x12   :  { %s1228_s30 = smov 64   ;;  %s1229_s6 = smov 4  }
  0x13   :  { %36 = dma.hbm_to_vmem [thread:$0]  %s1434_s1, 3072, %s31_s19, [#allocation6], %s1228_s30, %s1228_s30, %s1229_s6  }
  0x14   :  { %s1154_s11 = scalar_lea.hbm %s1433_s0, 256 }
  0x15   :  { %p1155_p8 = scmp.ne.s32.totalorder %s1433_s0, %s1154_s11  ;;  %p1158_p9 = scmp.lt.u32.totalorder %s1154_s11, %s1433_s0 }
  0x17   :  { %p1160_p10 = pnand %p1158_p9, %p1155_p8 }
  0x19   :  { %1163 = shalt.err (!%p1160_p10)
}
  0x1a   :  { %s1164_s16 = scalar_lea.vmem %s1266_s21, 256  ;;  %p1169_p12 = scmp.lt.s32.totalorder %s1266_s21, %s1266_s21 }
  0x1b   :  { %p1165_p11 = scmp.ne.s32.totalorder %s1266_s21, %s1164_s16  ;;  %p1170_p13 = scmp.lt.s32.totalorder %s1164_s16, %s1164_s16 }
  0x1d   :  { %p1171_p0 = por %p1170_p13, %p1169_p12 }
  0x1f   :  { %p1172_p1 = pnand %p1171_p0, %p1165_p11 }
  0x21   :  { %1175 = shalt.err (!%p1172_p1)
}
  0x22   :  { %24 = dma.hbm_to_vmem [thread:$0]  %s1433_s0, 256, %s1266_s21, [#allocation3], %s1228_s30, %s1228_s30, %s1229_s6  }
  0x23   :  { %s1230_s18 = smov [#allocation7]   ;;  %s1176_s23 = scalar_lea.hbm %s1436_s3, 3072 }
  0x24   :  { %s44_s19 = sshll.u32 %s1230_s18, 4  ;;  %p1177_p2 = scmp.ne.s32.totalorder %s1436_s3, %s1176_s23  ;;  %s45_s19 = int_to_ptr.vmem [resolvable:$true] %s44_s19 }
  0x25   :  { %p1180_p3 = scmp.lt.u32.totalorder %s1176_s23, %s1436_s3 }
  0x27   :  { %p1182_p4 = pnand %p1180_p3, %p1177_p2 }
  0x29   :  { %1185 = shalt.err (!%p1182_p4)
}
  0x2a   :  { %s1186_s28 = scalar_lea.vmem %s45_s19, 3072  ;;  %p1191_p6 = scmp.lt.s32.totalorder %s45_s19, %s45_s19 }
  0x2b   :  { %p1187_p5 = scmp.ne.s32.totalorder %s45_s19, %s1186_s28  ;;  %p1192_p7 = scmp.lt.s32.totalorder %s1186_s28, %s1186_s28 }
  0x2d   :  { %p1193_p8 = por %p1192_p7, %p1191_p6 }
  0x2f   :  { %p1194_p9 = pnand %p1193_p8, %p1187_p5 }
  0x31   :  { %1197 = shalt.err (!%p1194_p9)
}
  0x32   :  { %50 = dma.hbm_to_vmem [thread:$0]  %s1436_s3, 3072, %s45_s19, [#allocation6], %s1228_s30, %s1228_s30, %s1229_s6  }
  0x33   :  { %1220 = dma.done.wait [#allocation3], 256  }
  0x34   :  { %1221 = vsyncadd [#allocation3], 4294967040 }
  0x35   :  { %1222 = dma.done.wait [#allocation6], 6144  }
  0x36   :  { %1223 = vsyncadd [#allocation6], 4294961152  ;;  %v1080_v0 = vld [vmem:[#allocation5 + $0x40] sm:$0xff]   ;;  %v1083_v3 = vld [vmem:[#allocation5 + $0x48] sm:$0xff]   ;;  %v69_v7 = vlaneseq  ;;  %vm1231_vm0 = vmmov 1   ;;  %v1232_v22 = vmov 0  }
  0x37   :  { %v1081_v1 = vld [vmem:[#allocation5] sm:$0xff]   ;;  %954 = vmatprep.subr.bf16.mxu0 %v1080_v0  ;;  %v1084_v4 = vld [vmem:[#allocation5 + $0x8] sm:$0xff]   ;;  %v1086_v6 = vld [vmem:[#allocation5 + $0x50] sm:$0xff]   ;;  %vm140_vm2 = vsmask.f32 256  ;;  %vm158_vm10 = vcmask 1040384  }
  0x38   :  { %v1082_v2 = vld [vmem:[#allocation5 + $0x80] sm:$0xff]   ;;  %955 = vmatpush3.bf16.msra.mxu0 %v1081_v1  ;;  %v1085_v5 = vld [vmem:[#allocation5 + $0x88] sm:$0xff]   ;;  %v1087_v8 = vld [vmem:[#allocation5 + $0x10] sm:$0xff]   ;;  %v70_v12 = vshrl.u32 %v69_v7, 7  ;;  %vm161_vm7 = vsmask.f32 7424 }
  0x39   :  { %1030 = vmatprep.subr.bf16.mxu1 %v1082_v2  ;;  %956 = vmatprep.subr.bf16.mxu0 %v1083_v3  ;;  %v1088_v9 = vld [vmem:[#allocation5 + $0x90] sm:$0xff]   ;;  %v1089_v10 = vld [vmem:[#allocation5 + $0x58] sm:$0xff]   ;;  %v1092_v14 = vld [vmem:[#allocation5 + $0x60] sm:$0xff]   ;;  %vm169_vm11 = vcmask 1047552  }
  0x3a   :  { %1031 = vmatpush3.bf16.msra.mxu1 %v1082_v2  ;;  %v1090_v11 = vld [vmem:[#allocation5 + $0x18] sm:$0xff]   ;;  %vm181_vm1 = vmpackc.low %vm1231_vm0, %vm1231_vm0  ;;  %v1094_v15 = vld [vmem:[#allocation5 + $0xa0] sm:$0xff]   ;;  %v71_v16 = vadd.s32 8, %v70_v12  ;;  %v73_v18 = vadd.s32 24, %v70_v12  ;;  %v72_v20 = vadd.s32 16, %v70_v12  ;;  %v78_v21 = vand.u32 15, %v70_v12 }
  0x3b   :  { %1032 = vmatprep.subr.bf16.mxu1 %v1085_v5  ;;  %v1091_v13 = vld [vmem:[#allocation5 + $0x98] sm:$0xff]   ;;  %v1093_v17 = vld [vmem:[#allocation5 + $0x20] sm:$0xff]   ;;  %v1095_v19 = vld [vmem:[#allocation5 + $0x68] sm:$0xff]   ;;  %v1318_v23 = vsel %vm181_vm1, 65537, %v1232_v22 }
  0x3c   :  { %957 = vmatpush3.bf16.msra.mxu0 %v1084_v4  ;;  %v1097_v24 = vld [vmem:[#allocation5 + $0xa8] sm:$0xff]   ;;  %v85_v25 = vand.u32 15, %v71_v16  ;;  %v99_v27 = vand.u32 15, %v73_v18  ;;  %v1098_v28 = vld [vmem:[#allocation5 + $0x70] sm:$0xff]   ;;  %v92_v29 = vand.u32 15, %v72_v20  ;;  %vm122_vm3 = vcmp.ne.s32.totalorder %v78_v21, 0  ;;  %vm1354_vm14 = vmand %vm158_vm10, %vm140_vm2 }
  0x3d   :  { %958 = vmatprep.subr.bf16.mxu0 %v1086_v6  ;;  %v1096_v26 = vld [vmem:[#allocation5 + $0x28] sm:$0xff]   ;;  %v1099_v30 = vld [vmem:[#allocation5 + $0x30] sm:$0xff]   ;;  %v1101_v33 = vld [vmem:[#allocation5 + $0x78] sm:$0xff]  }
  0x3e   :  { %1033 = vmatpush3.bf16.msra.mxu1 %v1085_v5  ;;  %v1100_v31 = vld [vmem:[#allocation5 + $0xb0] sm:$0xff]   ;;  %vm1320_vm4 = vcmp.ne.s32.totalorder %v85_v25, 15  ;;  %vm1324_vm5 = vcmp.ne.s32.totalorder %v99_v27, 15  ;;  %vm180_vm6 = vmpackc.low %vm122_vm3, %vm122_vm3  ;;  %v1330_v36 = vld [vmem:[#allocation2 + $0x8] sm:$0xff]   ;;  %vm1332_vm8 = vcmp.ne.s32.totalorder %v92_v29, 0 }
  0x3f   :  { %1034 = vmatprep.subr.bf16.mxu1 %v1088_v9  ;;  %v1328_v35 = vld [vmem:[#allocation2] sm:$0xff]   ;;  %v184_v38 = vsel %vm180_vm6, 65537, %v1232_v22  ;;  %vm207_vm9 = vmpackc.low %vm1320_vm4, %vm1320_vm4  ;;  %v1103_v39 = vld [vmem:[#allocation5 + $0xb8] sm:$0xff]   ;;  %v152_v45 = vshll.u32 %v1330_v36, 16  ;;  %v149_v47 = vshrl.u32 %v1330_v36, 16 }
  0x40   :  { %959 = vmatpush3.bf16.msra.mxu0 %v1087_v8  ;;  %v892_v40 = vcombine.low %v184_v38, %v1318_v23  ;;  %v211_v41 = vsel %vm207_vm9, 65537, %v1232_v22  ;;  %vm209_vm12 = vmpackc.low %vm1324_vm5, %vm1324_vm5  ;;  %v1102_v42 = vld [vmem:[#allocation5 + $0x38] sm:$0xff]   ;;  %v142_v43 = vshrl.u32 %v1328_v35, 16  ;;  %457 = vmatprep.mubr.bf16.mxu0 %v1328_v35  ;;  %v145_v44 = vshll.u32 %v1328_v35, 16  ;;  %v1106_v50 = vld [vmem:[#allocation7 + $0x40] sm:$0xff]  }
  0x41   :  { %960 = vmatprep.subr.bf16.mxu0 %v1089_v10  ;;  %v894_v46 = vcombine.low %v1318_v23, %v211_v41  ;;  %vm182_vm13 = vmpackc.low %vm1332_vm8, %vm1332_vm8  ;;  %v213_v48 = vsel %vm209_vm12, 65537, %v1232_v22  ;;  %v164_v54 = vrot.slane %v152_v45, 1  ;;  %v151_v62 = vrot.slane %v149_v47, 7  ;;  %v1107_v0 = vld [vmem:[#allocation7] sm:$0xff]   ;;  %v1108_v2 = vld [vmem:[#allocation7 + $0x48] sm:$0xff]  }
  0x42   :  { %1035 = vmatpush3.bf16.msra.mxu1 %v1088_v9  ;;  %v186_v49 = vsel %vm182_vm13, 65537, %v1232_v22  ;;  %v144_v51 = vrot.slane %v142_v43, 7  ;;  %v162_v53 = vrot.slane %v145_v44, 1  ;;  %vm1358_vm15 = vcmp.ne.s16.totalorder %v892_v40, 0  ;;  %vm1368_vm1 = vmand %vm169_vm11, %vm161_vm7  ;;  %v1111_v3 = vld [vmem:[#allocation7 + $0x80] sm:$0xff]   ;;  %v1109_v7 = vld [vmem:[#allocation7 + $0x8] sm:$0xff]  }
  0x43   :  { %1036 = vmatprep.subr.bf16.mxu1 %v1091_v13  ;;  %vm1362_vm0 = vcmp.ne.s16.totalorder %v894_v46, 0  ;;  %v895_v58 = vcombine.low %v1318_v23, %v213_v48  ;;  %v893_v59 = vcombine.low %v186_v49, %v1318_v23  ;;  %v166_v63 = vor.u32 %v164_v54, %v149_v47  ;;  %v1110_v9 = vld [vmem:[#allocation7 + $0x50] sm:$0xff]   ;;  %v1116_v16 = vld [vmem:[#allocation7 + $0x60] sm:$0xff]   ;;  %v1120_v20 = vld [vmem:[#allocation7 + $0x98] sm:$0xff]  }
  0x44   :  { %961 = vmatpush3.bf16.msra.mxu0 %v1090_v11  ;;  %v147_v60 = vor.u32 %v145_v44, %v144_v51  ;;  %v163_v61 = vor.u32 %v162_v53, %v142_v43  ;;  %v154_v10 = vor.u32 %v152_v45, %v151_v62  ;;  %v1112_v11 = vld [vmem:[#allocation7 + $0x10] sm:$0xff]   ;;  %v1118_v18 = vld [vmem:[#allocation7 + $0x20] sm:$0xff]   ;;  %v1121_v21 = vld [vmem:[#allocation7 + $0x28] sm:$0xff]  }
  0x45   :  { %962 = vmatprep.subr.bf16.mxu0 %v1092_v14  ;;  %vm1374_vm3 = vcmp.ne.s16.totalorder %v895_v58, 0  ;;  %v171_v6 = vsel %vm1368_vm1, %v166_v63, 0  ;;  %vm1387_vm4 = vcmp.ne.s16.totalorder %v893_v59, 0  ;;  %v1114_v14 = vld [vmem:[#allocation7 + $0x88] sm:$0xff]   ;;  %v1122_v22 = vld [vmem:[#allocation7 + $0x70] sm:$0xff]   ;;  %v1123_v23 = vld [vmem:[#allocation7 + $0xa0] sm:$0xff]  }
  0x46   :  { %1037 = vmatpush3.bf16.msra.mxu1 %v1091_v13  ;;  %v160_v4 = vsel %vm1354_vm14, 0, %v147_v60  ;;  %v165_v5 = vsel %vm161_vm7, %v163_v61, %v164_v54  ;;  %v155_v12 = vsel %vm140_vm2, %v144_v51, %v154_v10  ;;  %v1113_v13 = vld [vmem:[#allocation7 + $0x58] sm:$0xff]   ;;  %v896_v32 = vld [vmem:[%s1435_s2] ss:$0 sm:$0xff] }
  0x47   :  { %1038 = vmatprep.subr.bf16.mxu1 %v1094_v15  ;;  %1046 = vmatprep.mubr.msk.bf16.mxu1 %vm1362_vm0, %v165_v5  ;;  %v1125_v25 = vld [vmem:[#allocation7 + $0x78] sm:$0xff]   ;;  %v925_v56 = vld [vmem:[%s1437_s4] ss:$0 sm:$0xff]  ;;  %s1233_s4 = smov [#allocation8]  }
  0x48   :  { %963 = vmatpush3.bf16.msra.mxu0 %v1093_v17  ;;  %v1117_v17 = vld [vmem:[#allocation7 + $0x90] sm:$0xff]   ;;  %v1127_v27 = vld [vmem:[#allocation7 + $0x38] sm:$0xff]   ;;  %s877_s6 = sshll.u32 %s1233_s4, 4  ;;  %s878_s6 = int_to_ptr.vmem [resolvable:$true] %s877_s6 }
  0x49   :  { %964 = vmatprep.subr.bf16.mxu0 %v1095_v19  ;;  %v1119_v19 = vld [vmem:[#allocation7 + $0x68] sm:$0xff]   ;;  %v1129_v29 = vld [vmem:[#allocation7 + $0xb8] sm:$0xff]   ;;  %s1198_s7 = scalar_lea.vmem %s878_s6, 512  ;;  %p1203_p11 = scmp.lt.s32.totalorder %s878_s6, %s878_s6 }
  0x4a   :  { %1039 = vmatpush3.bf16.msra.mxu1 %v1094_v15  ;;  %v1115_v15 = vld [vmem:[#allocation7 + $0x18] sm:$0xff]   ;;  %p1199_p10 = scmp.ne.s32.totalorder %s878_s6, %s1198_s7  ;;  %p1204_p12 = scmp.lt.s32.totalorder %s1198_s7, %s1198_s7 }
  0x4b   :  { %1040 = vmatprep.subr.bf16.mxu1 %v1097_v24 }
  0x4c   :  { %965 = vmatpush3.bf16.msra.mxu0 %v1096_v26  ;;  %v1126_v26 = vld [vmem:[#allocation7 + $0xa8] sm:$0xff]   ;;  %p1205_p13 = por %p1204_p12, %p1203_p11 }
  0x4d   :  { %966 = vmatprep.subr.bf16.mxu0 %v1098_v28  ;;  %v1128_v28 = vld [vmem:[#allocation7 + $0xb0] sm:$0xff]  }
  0x4e   :  { %1041 = vmatpush3.bf16.msra.mxu1 %v1097_v24  ;;  %v1124_v24 = vld [vmem:[#allocation7 + $0x30] sm:$0xff]   ;;  %p1206_p0 = pnand %p1205_p13, %p1199_p10 }
  0x4f   :  { %1042 = vmatprep.subr.bf16.mxu1 %v1100_v31 }
  0x50   :  { %967 = vmatpush3.bf16.msra.mxu0 %v1099_v30 }
  0x51   :  { %968 = vmatprep.subr.bf16.mxu0 %v1101_v33 }
  0x52   :  { %1043 = vmatpush3.bf16.msra.mxu1 %v1100_v31 }
  0x53   :  { %1044 = vmatprep.subr.bf16.mxu1 %v1103_v39 }
  0x54   :  { %969 = vmatpush3.bf16.msra.mxu0 %v1102_v42 }
  0x55   :  { %992 = vmatprep.subr.bf16.mxu0 %v1106_v50 }
  0x56   :  { %1045 = vmatpush3.bf16.msra.mxu1 %v1103_v39 }
  0x57   :  { %921 = vmatmul.mubr.msk.bf16.vlgmr.msra.gmra.mrb[0].mxu0 %vm1358_vm15, %v160_v4  ;;  %1050 = vmatprep.subr.bf16.mxu1 %v1111_v3 }
  0x58   :  { %465 = vmatprep.mubr.bf16.mxu0 %v1330_v36  ;;  %993 = vmatpush3.bf16.msra.mxu0 %v1107_v0 }
  0x59   :  { %1047 = vmatmul.mubr.msk.bf16.vlgmr.msra.gmra.mrb[0].mxu1 %vm1374_vm3, %v171_v6  ;;  %994 = vmatprep.subr.bf16.mxu0 %v1108_v2 }
  0x5a   :  { %1051 = vmatpush3.bf16.msra.mxu1 %v1111_v3 }
  0x5b   :  { %1052 = vmatprep.subr.bf16.mxu1 %v1114_v14 }
  0x5c   :  { %995 = vmatpush3.bf16.msra.mxu0 %v1109_v7 }
  0x5d   :  { %996 = vmatprep.subr.bf16.mxu0 %v1110_v9 }
  0x5e   :  { %1053 = vmatpush3.bf16.msra.mxu1 %v1114_v14 }
  0x5f   :  { %922 = vmatmul.mubr.msk.bf16.gmra.mrb[4].mxu0 %vm1387_vm4, %v155_v12  ;;  %1054 = vmatprep.subr.bf16.mxu1 %v1117_v17 }
  0x60   :  { %997 = vmatpush3.bf16.msra.mxu0 %v1112_v11 }
  0x61   :  { %998 = vmatprep.subr.bf16.mxu0 %v1113_v13 }
  0x62   :  { %1055 = vmatpush3.bf16.msra.mxu1 %v1117_v17 }
  0x63   :  { %1056 = vmatprep.subr.bf16.mxu1 %v1120_v20 }
  0x64   :  { %999 = vmatpush3.bf16.msra.mxu0 %v1115_v15 }
  0x65   :  { %1000 = vmatprep.subr.bf16.mxu0 %v1116_v16 }
  0x66   :  { %1057 = vmatpush3.bf16.msra.mxu1 %v1120_v20 }
  0x67   :  { %1058 = vmatprep.subr.bf16.mxu1 %v1123_v23 }
  0x68   :  { %1001 = vmatpush3.bf16.msra.mxu0 %v1118_v18 }
  0x69   :  { %1002 = vmatprep.subr.bf16.mxu0 %v1119_v19 }
  0x6a   :  { %1059 = vmatpush3.bf16.msra.mxu1 %v1123_v23 }
  0x6b   :  { %1060 = vmatprep.subr.bf16.mxu1 %v1126_v26 }
  0x6c   :  { %1003 = vmatpush3.bf16.msra.mxu0 %v1121_v21 }
  0x6d   :  { %1004 = vmatprep.subr.bf16.mxu0 %v1122_v22 }
  0x6e   :  { %1061 = vmatpush3.bf16.msra.mxu1 %v1126_v26 }
  0x6f   :  { %1062 = vmatprep.subr.bf16.mxu1 %v1128_v28 }
  0x70   :  { %1005 = vmatpush3.bf16.msra.mxu0 %v1124_v24 }
  0x71   :  { %1006 = vmatprep.subr.bf16.mxu0 %v1125_v25 }
  0x72   :  { %1063 = vmatpush3.bf16.msra.mxu1 %v1128_v28 }
  0x73   :  { %1064 = vmatprep.subr.bf16.mxu1 %v1129_v29 }
  0x74   :  { %1007 = vmatpush3.bf16.msra.mxu0 %v1127_v27  ;;  %v856_v27 = vunpack.c.l.bf16 %v1328_v35 }
  0x76   :  { %1065 = vmatpush3.bf16.msra.mxu1 %v1129_v29 }
 0x12a   :  { %v970_v30 = vpop.f32.mrb[0].mxu0 }
 0x12b   :  { %v971_v31 = vpop.f32.mrb[1].mxu0 }
 0x12c   :  { %v972_v33 = vadd.f32 %v971_v31, %v970_v30  ;;  %v1048_v34 = vpop.f32.mrb[0].mxu1  ;;  %v973_v37 = vpop.f32.mrb[2].mxu0 }
 0x12d   :  { %v508_v38 = vpop.f32.mrb[1].mxu1  ;;  %v974_v39 = vpop.f32.mrb[3].mxu0 }
 0x12e   :  { %v460_v40 = vadd.f32 %v972_v33, %v896_v32  ;;  %v975_v41 = vadd.f32 %v974_v39, %v973_v37  ;;  %v1049_v42 = vpop.f32.mrb[2].mxu1  ;;  %v857_v33 = vunpack.c.h.bf16 %v1328_v35 }
 0x12f   :  { %v511_v43 = vpop.f32.mrb[3].mxu1 }
 0x130   :  { %v509_v44 = vadd.f32 %v508_v38, %v460_v40  ;;  %v463_v45 = vadd.f32 %v975_v41, %v896_v32 }
 0x132   :  { %v512_v46 = vadd.f32 %v511_v43, %v463_v45  ;;  %v976_v47 = vpop.f32.mrb[4].mxu0  ;;  %v523_v49 = vmax.f32 %v509_v44, 0.0  ;;  %v859_v43 = vunpack.c.h.bf16 %v1330_v36 }
 0x133   :  { %v977_v48 = vpop.f32.mrb[5].mxu0 }
 0x134   :  { %v524_v50 = vmax.f32 %v512_v46, 0.0  ;;  %v978_v51 = vadd.f32 %v977_v48, %v976_v47  ;;  %v979_v53 = vpop.f32.mrb[6].mxu0 }
 0x135   :  { %v980_v54 = vpop.f32.mrb[7].mxu0 }
 0x136   :  { %v527_v58 = vpack.c.bf16 %v524_v50, %v523_v49  ;;  %v468_v59 = vadd.f32 %v978_v51, %v896_v32  ;;  %v981_v60 = vadd.f32 %v980_v54, %v979_v53 }
 0x138   :  { %v530_v61 = vshrl.u32 %v527_v58, 16  ;;  %v517_v62 = vadd.f32 %v1048_v34, %v468_v59  ;;  %v471_v63 = vadd.f32 %v981_v60, %v896_v32  ;;  %790 = vmatprep.mubr.bf16.mxu0 %v527_v58  ;;  %v533_v2 = vshll.u32 %v527_v58, 16 }
 0x139   :  { %v858_v34 = vunpack.c.l.bf16 %v1330_v36 }
 0x13a   :  { %v532_v0 = vrot.slane %v530_v61, 7  ;;  %v520_v3 = vadd.f32 %v1049_v42, %v471_v63  ;;  %v525_v5 = vmax.f32 %v517_v62, 0.0  ;;  %v547_v7 = vrot.slane %v533_v2, 1 }
 0x13c   :  { %v535_v4 = vor.u32 %v533_v2, %v532_v0  ;;  %v526_v6 = vmax.f32 %v520_v3, 0.0  ;;  %v548_v13 = vor.u32 %v547_v7, %v530_v61 }
 0x13e   :  { %v546_v9 = vsel %vm1354_vm14, 0, %v535_v4  ;;  %v528_v10 = vpack.c.bf16 %v526_v6, %v525_v5 }
 0x13f   :  { %950 = vmatmul.mubr.msk.bf16.vlgmr.msra.gmra.mrb[8].mxu0 %vm1358_vm15, %v546_v9 }
 0x140   :  { %v537_v11 = vshrl.u32 %v528_v10, 16  ;;  %v540_v12 = vshll.u32 %v528_v10, 16  ;;  %798 = vmatprep.mubr.bf16.mxu0 %v528_v10 }
 0x142   :  { %v549_v14 = vrot.slane %v540_v12, 1  ;;  %v539_v15 = vrot.slane %v537_v11, 7 }
 0x144   :  { %v550_v16 = vsel %vm161_vm7, %v548_v13, %v549_v14  ;;  %v542_v17 = vor.u32 %v540_v12, %v539_v15  ;;  %v551_v18 = vor.u32 %v549_v14, %v537_v11 }
 0x145   :  { %1066 = vmatprep.mubr.msk.bf16.mxu1 %vm1362_vm0, %v550_v16 }
 0x146   :  { %v543_v52 = vsel %vm140_vm2, %v532_v0, %v542_v17  ;;  %v554_v19 = vsel %vm1368_vm1, %v551_v18, 0 }
 0x147   :  { %951 = vmatmul.mubr.msk.bf16.gmra.mrb[12].mxu0 %vm1387_vm4, %v543_v52  ;;  %1067 = vmatmul.mubr.msk.bf16.vlgmr.msra.gmra.mrb[4].mxu1 %vm1374_vm3, %v554_v19 }
 0x212   :  { %v1008_v55 = vpop.f32.mrb[8].mxu0 }
 0x213   :  { %v1009_v20 = vpop.f32.mrb[9].mxu0 }
 0x214   :  { %v1010_v21 = vadd.f32 %v1009_v20, %v1008_v55  ;;  %v1011_v22 = vpop.f32.mrb[10].mxu0 }
 0x215   :  { %v1012_v23 = vpop.f32.mrb[11].mxu0 }
 0x216   :  { %v1013_v24 = vadd.f32 %v1012_v23, %v1011_v22  ;;  %v793_v57 = vadd.f32 %v1010_v21, %v925_v56 }
 0x218   :  { %v796_v32 = vadd.f32 %v1013_v24, %v925_v56 }
 0x21a   :  { %v1014_v25 = vpop.f32.mrb[12].mxu0  ;;  %v1068_v26 = vpop.f32.mrb[4].mxu1 }
 0x21b   :  { %v1015_v8 = vpop.f32.mrb[13].mxu0  ;;  %v841_v28 = vpop.f32.mrb[5].mxu1 }
 0x21c   :  { %v1016_v29 = vadd.f32 %v1015_v8, %v1014_v25  ;;  %v842_v1 = vadd.f32 %v841_v28, %v793_v57  ;;  %v1017_v30 = vpop.f32.mrb[14].mxu0  ;;  %v1069_v31 = vpop.f32.mrb[6].mxu1 }
 0x21d   :  { %v1018_v37 = vpop.f32.mrb[15].mxu0  ;;  %v844_v38 = vpop.f32.mrb[7].mxu1 }
 0x21e   :  { %v801_v39 = vadd.f32 %v1016_v29, %v925_v56  ;;  %v860_v40 = vadd.f32 %v856_v27, %v842_v1  ;;  %v1019_v41 = vadd.f32 %v1018_v37, %v1017_v30  ;;  %v845_v42 = vadd.f32 %v844_v38, %v796_v32 }
 0x220   :  { %v850_v44 = vadd.f32 %v1068_v26, %v801_v39  ;;  %v864_v45 = vmax.f32 %v860_v40, 0.0  ;;  %v804_v46 = vadd.f32 %v1019_v41, %v925_v56  ;;  %v861_v47 = vadd.f32 %v857_v33, %v845_v42 }
 0x222   :  { %v862_v48 = vadd.f32 %v858_v34, %v850_v44  ;;  %868 = vst [vmem:[#allocation8] sm:$0xff] %v864_v45  ;;  %v853_v49 = vadd.f32 %v1069_v31, %v804_v46  ;;  %v865_v50 = vmax.f32 %v861_v47, 0.0 }
 0x224   :  { %v866_v35 = vmax.f32 %v862_v48, 0.0  ;;  %v863_v51 = vadd.f32 %v859_v43, %v853_v49  ;;  %869 = vst [vmem:[#allocation8 + $0x8] sm:$0xff] %v865_v50 }
 0x226   :  { %870 = vst [vmem:[#allocation8 + $0x10] sm:$0xff] %v866_v35  ;;  %v867_v53 = vmax.f32 %v863_v51, 0.0 }
 0x228   :  { %871 = vst [vmem:[#allocation8 + $0x18] sm:$0xff] %v867_v53 }
 0x229   :  { %1209 = shalt.err (!%p1206_p0)
}
 0x22a   :  { %s1210_s10 = scalar_lea.hbm %s1438_s5, 512 }
 0x22b   :  { %p1211_p1 = scmp.ne.s32.totalorder %s1438_s5, %s1210_s10  ;;  %p1214_p2 = scmp.lt.u32.totalorder %s1210_s10, %s1438_s5 }
 0x22d   :  { %p1216_p3 = pnand %p1214_p2, %p1211_p1 }
 0x22f   :  { %1219 = shalt.err (!%p1216_p3)
}
 0x230   :  { %s1234_s15 = smov 128   ;;  %s1235_s16 = smov 8  }
 0x231   :  { %883 = dma.vmem_to_hbm [thread:$0]  %s878_s6, 512, %s1438_s5, [#allocation4], %s1234_s15, %s1234_s15, %s1235_s16  }
 0x232   :  { %1224 = dma.done.wait [#allocation4], 512  }
 0x233   :  { %1225 = vsyncadd [#allocation4], 4294966784 }
 0x234   :  { %887 = vsyncpa [#allocation3], 1 }
 0x235   :  { %888 = vsyncpa [#allocation6], 1 }
 0x236   :  { %889 = vsyncpa [#allocation4], 1 }

</bundles_post_ra>
